<compile_context>
chip_gen: v6e
topology: v6e:2x2x1
jax: 0.10.0
libtpu: 0.0.40
codegen_flags: <defaults>
</compile_context>

<pallas_src>
import jax
import jax.numpy as jnp
from jax import lax
from jax.experimental import pallas as pl
from jax.experimental.pallas import tpu as pltpu

# dot_general dimension numbers (no in-kernel transposes needed):
_NT = (((1,), (1,)), ((), ()))   # A @ B.T  (contract last dim of both)
_NN = (((1,), (0,)), ((), ()))   # A @ B


# ----------------------------- kernels ------------------------------------


def _dot_kernel(h_ref, enc_ref, o_ref):
    # h_ref: (QB, H)  enc_ref: (Sp, H)  o_ref: (QB, Sp)
    # One MXU pass: all decode steps fill the sublane rows of the LHS,
    # output is written lane-dense.
    o_ref[...] = lax.dot_general(h_ref[...], enc_ref[...], _NT,
                                 preferred_element_type=jnp.float32)


def _general_kernel(h_ref, w_ref, enc_ref, o_ref):
    # Hoist: h·Wᵀ·encᵀ == h·(enc·W)ᵀ  -> project the encoder side once per
    # call (S·H² MXU flops amortized over all QB decode steps), then score
    # with the same q·kᵀ contraction as the 'dot' path.
    k = lax.dot_general(enc_ref[...], w_ref[...], _NN,
                        preferred_element_type=jnp.float32)          # (Sp, H)
    o_ref[...] = lax.dot_general(h_ref[...], k, _NT,
                                 preferred_element_type=jnp.float32)  # (QB, Sp)


def _concat_kernel(h_ref, w_ref, v_ref, enc_ref, o_ref):
    # Hoist: (h + enc)·Wᵀ == h·Wᵀ + enc·Wᵀ.  Both projections are single MXU
    # passes; tanh runs on the EUP; the v contraction is a VPU multiply +
    # XLU lane reduce over H (separate slots from the MXU).
    hw = lax.dot_general(h_ref[...], w_ref[...], _NT,
                         preferred_element_type=jnp.float32)          # (QB, H)
    ew = lax.dot_general(enc_ref[...], w_ref[...], _NT,
                         preferred_element_type=jnp.float32)          # (Sp, H)
    x = jnp.tanh(hw[:, None, :] + ew[None, :, :])                     # (QB, Sp, H)
    v = v_ref[...].reshape(1, 1, v_ref.shape[1])                      # (1, 1, H)
    o_ref[...] = jnp.sum(x * v, axis=-1)                              # (QB, Sp)


# ----------------------------- wrappers ------------------------------------


def _round_up(x, m):
    return ((x + m - 1) // m) * m


def attention_scores_batched(hidden_qh, enc_sh, method="dot",
                             fc_weight=None, concat_weight=None):
    """Score Q decode-step hidden states against one encoder sequence.

    hidden_qh: (Q, H) float32   (Q decode steps batched into ONE pallas_call)
    enc_sh:    (S, H) float32
    returns:   (Q, S) float32 raw attention scores.
    """
    Q, H = hidden_qh.shape
    S, H2 = enc_sh.shape
    assert H == H2

    # Sublane-pad the query axis (>=8) and lane-pad the score axis (>=128) so
    # the MXU LHS has full rows and the output store is unmasked / lane-dense.
    Qp = max(8, _round_up(Q, 8))
    QB = Qp if Qp <= 512 else 512          # query rows per grid block
    Qp = _round_up(Qp, QB)
    Sp = max(128, _round_up(S, 128))

    f32 = jnp.float32
    hp = jnp.zeros((Qp, H), f32).at[:Q].set(hidden_qh.astype(f32))
    encp = jnp.zeros((Sp, H), f32).at[:S].set(enc_sh.astype(f32))

    grid = (Qp // QB,)
    h_spec = pl.BlockSpec((QB, H), lambda i: (i, 0))
    enc_spec = pl.BlockSpec((Sp, H), lambda i: (0, 0))   # resident across q-blocks
    w_spec = pl.BlockSpec((H, H), lambda i: (0, 0))
    v_spec = pl.BlockSpec((1, H), lambda i: (0, 0))
    out_spec = pl.BlockSpec((QB, Sp), lambda i: (i, 0))
    out_shape = jax.ShapeDtypeStruct((Qp, Sp), f32)
    cparams = pltpu.CompilerParams(dimension_semantics=("parallel",))

    if method == "dot":
        scores = pl.pallas_call(
            _dot_kernel, out_shape=out_shape, grid=grid,
            in_specs=[h_spec, enc_spec], out_specs=out_spec,
            compiler_params=cparams,
        )(hp, encp)
    elif method == "general":
        scores = pl.pallas_call(
            _general_kernel, out_shape=out_shape, grid=grid,
            in_specs=[h_spec, w_spec, enc_spec], out_specs=out_spec,
            compiler_params=cparams,
        )(hp, fc_weight.astype(f32), encp)
    elif method == "concat":
        scores = pl.pallas_call(
            _concat_kernel, out_shape=out_shape, grid=grid,
            in_specs=[h_spec, w_spec, v_spec, enc_spec], out_specs=out_spec,
            compiler_params=cparams,
        )(hp, fc_weight.astype(f32), concat_weight.astype(f32), encp)
    else:
        raise ValueError(f"unknown method {method!r}")

    return scores[:Q, :S]


def attention_forward(decoder_hidden, encoder_outputs, method="dot",
                      fc_weight=None, concat_weight=None):
    """Module-exact forward: decoder_hidden (1,H), encoder_outputs (1,S,H) -> (1,S)."""
    B, S, H = encoder_outputs.shape
    assert B == 1, "module's view(1, -1, 1) implies batch == 1"
    h2d = decoder_hidden.reshape(1, H)
    enc2d = encoder_outputs.reshape(S, H)
    return attention_scores_batched(h2d, enc2d, method, fc_weight, concat_weight)


# -------------------------- pure-JAX reference ------------------------------


def attention_ref_batched(hidden_qh, enc_sh, method="dot",
                          fc_weight=None, concat_weight=None):
    if method == "dot":
        return hidden_qh @ enc_sh.T
    elif method == "general":
        return (hidden_qh @ fc_weight.T) @ enc_sh.T
    elif method == "concat":
        x = hidden_qh[:, None, :] + enc_sh[None, :, :]            # (Q, S, H)
        out = jnp.tanh(jnp.einsum("qsh,oh->qso", x, fc_weight))   # (Q, S, H)
        return jnp.einsum("qsh,h->qs", out, concat_weight.reshape(-1))
    raise ValueError(method)


def attention_ref(decoder_hidden, encoder_outputs, method="dot",
                  fc_weight=None, concat_weight=None):
    B, S, H = encoder_outputs.shape
    return attention_ref_batched(decoder_hidden.reshape(1, H),
                                 encoder_outputs.reshape(S, H),
                                 method, fc_weight, concat_weight)


# ------------------------------- main ---------------------------------------


if __name__ == "__main__":
    H = 32   # hidden_size
    S = 8    # encoder sequence length
    Q = 8    # decode steps batched into one call (perf path)

    key = jax.random.PRNGKey(0)
    k1, k2, k3, k4, k5 = jax.random.split(key, 5)
    decoder_hidden = jax.random.normal(k1, (1, H), dtype=jnp.float32)
    encoder_outputs = jax.random.normal(k2, (1, S, H), dtype=jnp.float32)
    fc_weight = jax.random.normal(k3, (H, H), dtype=jnp.float32) * 0.1
    concat_weight = jax.random.normal(k4, (1, H), dtype=jnp.float32) * 0.1
    decode_steps = jax.random.normal(k5, (Q, H), dtype=jnp.float32)

    ok = True
    for method in ("dot", "general", "concat"):
        # Module-exact path: (1,H),(1,S,H) -> (1,S)
        out = jax.block_until_ready(attention_forward(
            decoder_hidden, encoder_outputs, method, fc_weight, concat_weight))
        ref = attention_ref(decoder_hidden, encoder_outputs, method,
                            fc_weight, concat_weight)
        if out.shape != (1, S) or not jnp.allclose(out, ref, atol=1e-4, rtol=1e-4):
            ok = False
            print(f"MISMATCH (module path) method={method}")

        # Batched decode-loop path: Q steps scored in ONE pallas_call.
        outb = jax.block_until_ready(attention_scores_batched(
            decode_steps, encoder_outputs.reshape(S, H), method,
            fc_weight, concat_weight))
        refb = attention_ref_batched(decode_steps, encoder_outputs.reshape(S, H),
                                     method, fc_weight, concat_weight)
        if outb.shape != (Q, S) or not jnp.allclose(outb, refb, atol=1e-4, rtol=1e-4):
            ok = False
            print(f"MISMATCH (batched path) method={method}")

    if ok:
        print("KERNEL_OK")
</pallas_src>

<mosaic_0001>
module attributes {stable_mosaic.version = 11 : i64} {
  func.func @_dot_kernel(%arg0: i32, %arg1: memref<8x32xf32, #tpu.memory_space<vmem>>, %arg2: memref<128x32xf32, #tpu.memory_space<vmem>>, %arg3: memref<8x128xf32, #tpu.memory_space<vmem>>) attributes {dimension_semantics = [#tpu.dimension_semantics<parallel>], iteration_bounds = array<i64: 1>, scalar_prefetch = 0 : i64, scratch_operands = 0 : i64, tpu.core_type = #tpu.core_type<tc>, window_params = [{transform_indices = @transform_0, window_bounds = array<i64: 8, 32>}, {pipeline_mode = #tpu.pipeline_mode<synchronous>, transform_indices = @transform_1, window_bounds = array<i64: 128, 32>}, {transform_indices = @transform_2, window_bounds = array<i64: 8, 128>}]} {
    %c0 = arith.constant 0 : index
    %c0_0 = arith.constant 0 : index
    %0 = vector.load %arg1[%c0, %c0_0] : memref<8x32xf32, #tpu.memory_space<vmem>>, vector<8x32xf32>
    %c0_1 = arith.constant 0 : index
    %c0_2 = arith.constant 0 : index
    %1 = vector.load %arg2[%c0_1, %c0_2] : memref<128x32xf32, #tpu.memory_space<vmem>>, vector<128x32xf32>
    %cst = arith.constant dense<0.000000e+00> : vector<8x128xf32>
    %2 = tpu.matmul %0, %1, %cst {dimension_numbers = #tpu.dot_dimension_numbers<[1], [1], [0], [0], [0, 0, 1, 0], [], []>} : vector<8x32xf32>, vector<128x32xf32>, vector<8x128xf32> -> vector<8x128xf32>
    %c0_3 = arith.constant 0 : index
    %c0_4 = arith.constant 0 : index
    %3 = vector.load %arg3[%c0_3, %c0_4] : memref<8x128xf32, #tpu.memory_space<vmem>>, vector<8x128xf32>
    tpu.vector_store %arg3[%c0_3, %c0_4], %2 {strides = array<i32>} : memref<8x128xf32, #tpu.memory_space<vmem>>, vector<8x128xf32>,
    return
  }
  func.func @transform_0(%arg0: i32) -> (i32, i32) {
    %c0_i32 = arith.constant 0 : i32
    %c0_i32_0 = arith.constant 0 : i32
    return %arg0, %c0_i32 : i32, i32
  }
  func.func @transform_1(%arg0: i32) -> (i32, i32) {
    %c0_i32 = arith.constant 0 : i32
    %c0_i32_0 = arith.constant 0 : i32
    %c0_i32_1 = arith.constant 0 : i32
    return %c0_i32, %c0_i32_0 : i32, i32
  }
  func.func @transform_2(%arg0: i32) -> (i32, i32) {
    %c0_i32 = arith.constant 0 : i32
    %c0_i32_0 = arith.constant 0 : i32
    return %arg0, %c0_i32 : i32, i32
  }
}

</mosaic_0001>

<bundles_post_ra>
// kernel: tpu_custom_call.1
= control target key start
LH: loop header
LB: loop body
LE: loop exit
PB: predicated region body
PF: predicated region fallthrough
CT: control target
= control target key end

     0   :  { %vm29_vm0 = vcmask 261120   ;;  %v260_v1 = vmov 0.0   ;;  %vm261_vm1 = vmmov 0   ;;  %s349_s0 = inlined_call_operand.vmem [shape: f32[8,32], index: 0, kind: input, shape index: {}]   ;;  %s350_s1 = inlined_call_operand.vmem [shape: f32[128,32], index: 1, kind: input, shape index: {}]   ;;  %s351_s2 = inlined_call_operand.hbm [shape: f32[8,128], index: 2, kind: output, shape index: {}]  }
   0x1   :  { %v28_v0 = vld [vmem:[%s350_s1 + $0x78] sm:$0xff]  ;;  %200 = vmatprep.subr.mxu0 %v260_v1  ;;  %232 = vmatprep.mubr.msk.f32.mxu0 %vm261_vm1, %v260_v1  ;;  %v27_v2 = vld [vmem:[%s350_s1 + $0x70] sm:$0xff] }
   0x2   :  { %201 = vmatpush3.xpose.msk.msra.mxu0 %vm29_vm0, %v28_v0 }
   0x3   :  { %202 = vmatprep.subr.mxu0 %v260_v1 }
   0x4   :  { %7 = vsyncpa [#allocation3], 0  ;;  %v26_v3 = vld [vmem:[%s350_s1 + $0x68] sm:$0xff]  ;;  %v25_v4 = vld [vmem:[%s350_s1 + $0x60] sm:$0xff]  ;;  %s262_s15 = smov [#allocation2]  }
   0x5   :  { %v24_v5 = vld [vmem:[%s350_s1 + $0x58] sm:$0xff]  ;;  %v23_v6 = vld [vmem:[%s350_s1 + $0x50] sm:$0xff]  ;;  %v22_v7 = vld [vmem:[%s350_s1 + $0x48] sm:$0xff]  ;;  %s158_s16 = sshll.u32 %s262_s15, 4  ;;  %s159_s16 = int_to_ptr.vmem [resolvable:$true] %s158_s16 }
   0x6   :  { %203 = vmatpush3.xpose.msk.msra.mxu0 %vm29_vm0, %v27_v2  ;;  %v21_v8 = vld [vmem:[%s350_s1 + $0x40] sm:$0xff]  ;;  %v20_v9 = vld [vmem:[%s350_s1 + $0x38] sm:$0xff]  ;;  %v19_v10 = vld [vmem:[%s350_s1 + $0x30] sm:$0xff]  ;;  %s238_s17 = scalar_lea.vmem %s159_s16, 128  ;;  %p243_p1 = scmp.lt.s32.totalorder %s159_s16, %s159_s16 }
   0x7   :  { %204 = vmatprep.subr.mxu0 %v260_v1  ;;  %v18_v11 = vld [vmem:[%s350_s1 + $0x28] sm:$0xff]  ;;  %v17_v12 = vld [vmem:[%s350_s1 + $0x20] sm:$0xff]  ;;  %v16_v13 = vld [vmem:[%s350_s1 + $0x18] sm:$0xff]  ;;  %p239_p0 = scmp.ne.s32.totalorder %s159_s16, %s238_s17  ;;  %p244_p2 = scmp.lt.s32.totalorder %s238_s17, %s238_s17 }
   0x8   :  { %v15_v14 = vld [vmem:[%s350_s1 + $0x10] sm:$0xff]  ;;  %v14_v15 = vld [vmem:[%s350_s1 + $0x8] sm:$0xff]  ;;  %v13_v16 = vld [vmem:[%s350_s1] sm:$0xff] }
   0x9   :  { %v12_v17 = vld [vmem:[%s349_s0] sm:$0xff]  ;;  %p245_p3 = por %p244_p2, %p243_p1 }
   0xa   :  { %205 = vmatpush3.xpose.msk.msra.mxu0 %vm29_vm0, %v26_v3 }
   0xb   :  { %206 = vmatprep.subr.mxu0 %v260_v1  ;;  %p246_p4 = pnand %p245_p3, %p239_p0 }
   0xe   :  { %207 = vmatpush3.xpose.msk.msra.mxu0 %vm29_vm0, %v25_v4 }
   0xf   :  { %208 = vmatprep.subr.mxu0 %v260_v1 }
  0x12   :  { %209 = vmatpush3.xpose.msk.msra.mxu0 %vm29_vm0, %v24_v5 }
  0x13   :  { %210 = vmatprep.subr.mxu0 %v260_v1 }
  0x16   :  { %211 = vmatpush3.xpose.msk.msra.mxu0 %vm29_vm0, %v23_v6 }
  0x17   :  { %212 = vmatprep.subr.mxu0 %v260_v1 }
  0x1a   :  { %213 = vmatpush3.xpose.msk.msra.mxu0 %vm29_vm0, %v22_v7 }
  0x1b   :  { %214 = vmatprep.subr.mxu0 %v260_v1 }
  0x1e   :  { %215 = vmatpush3.xpose.msk.msra.mxu0 %vm29_vm0, %v21_v8 }
  0x1f   :  { %216 = vmatprep.subr.mxu0 %v260_v1 }
  0x22   :  { %217 = vmatpush3.xpose.msk.msra.mxu0 %vm29_vm0, %v20_v9 }
  0x23   :  { %218 = vmatprep.subr.mxu0 %v260_v1 }
  0x26   :  { %219 = vmatpush3.xpose.msk.msra.mxu0 %vm29_vm0, %v19_v10 }
  0x27   :  { %220 = vmatprep.subr.mxu0 %v260_v1 }
  0x2a   :  { %221 = vmatpush3.xpose.msk.msra.mxu0 %vm29_vm0, %v18_v11 }
  0x2b   :  { %222 = vmatprep.subr.mxu0 %v260_v1 }
  0x2e   :  { %223 = vmatpush3.xpose.msk.msra.mxu0 %vm29_vm0, %v17_v12 }
  0x2f   :  { %224 = vmatprep.subr.mxu0 %v260_v1 }
  0x32   :  { %225 = vmatpush3.xpose.msk.msra.mxu0 %vm29_vm0, %v16_v13 }
  0x33   :  { %226 = vmatprep.subr.mxu0 %v260_v1 }
  0x36   :  { %227 = vmatpush3.xpose.msk.msra.mxu0 %vm29_vm0, %v15_v14 }
  0x37   :  { %228 = vmatprep.subr.mxu0 %v260_v1 }
  0x3a   :  { %229 = vmatpush3.xpose.msk.msra.mxu0 %vm29_vm0, %v14_v15 }
  0x3b   :  { %230 = vmatprep.subr.mxu0 %v260_v1 }
  0x3e   :  { %231 = vmatpush3.xpose.msk.msra.mxu0 %vm29_vm0, %v13_v16 }
  0x41   :  { %233 = vmatmul.mubr.msk.f32.vlgmr.msra.gmra.mxu0 %vm29_vm0, %v12_v17 }
 0x101   :  { %v147_v18 = vpop.f32.mrf.mxu0 }
 0x102   :  { %151 = vst [vmem:[#allocation2] sm:$0xff] %v147_v18 }
 0x103   :  { %v234_v19 = vpop.f32.mrf.mxu0 }
 0x104   :  { %249 = shalt.err (!%p246_p4)
}
 0x105   :  { %161 = dma.vmem_to_hbm [thread:$0]  %s159_s16, 128, %s351_s2, [#allocation3]  }
 0x106   :  { %258 = dma.done.wait [#allocation3], 128  }
 0x107   :  { %259 = vsyncadd [#allocation3], 4294967168 }
 0x108   :  { %165 = vsyncpa [#allocation3], 1 }

</bundles_post_ra>
